<compile_context>
chip_gen: v6e
topology: v6e:2x2x1
jax: 0.10.0
libtpu: 0.0.40
codegen_flags: <defaults>
</compile_context>

<pallas_src>
import jax
import jax.numpy as jnp
from jax.experimental import pallas as pl
from jax.experimental.pallas import tpu as pltpu


_VMEM_BUDGET_BYTES = 24 * 1024 * 1024   # target working set (double margin vs limit)
_VMEM_LIMIT_BYTES = 48 * 1024 * 1024    # scoped VMEM limit (<= v7x 64 MiB physical)


def _make_skiper_kernel(compute_dtype):
    """Fused component(SiLU) + channel-concat + 1x1-conv combiner kernel."""

    def kernel(x_ref, wp_ref, ws_ref, b_ref, o_ref):
        # x_ref block: (1, c_in, tile_l); wp/ws: (c_out, c_in); b: (c_out, 1).
        x = x_ref[0].astype(compute_dtype)          # (c_in, tile_l)
        proc = x * jax.nn.sigmoid(x)                # component = SiLU (EUP + VALU)

        # Channel contraction on the MXU, f32 accumulation.  Lanes = spatial,
        # so each output lane depends only on the same input lane (padded tail
        # lanes of a ragged block never pollute valid output lanes).
        out = (
            jnp.dot(wp_ref[...], proc, preferred_element_type=jnp.float32)
            + jnp.dot(ws_ref[...], x, preferred_element_type=jnp.float32)
            + b_ref[...]                            # (c_out, 1) lane-broadcast
        )
        o_ref[0] = out.astype(o_ref.dtype)          # direct store, no concat

    return kernel


def _choose_tile_l(l, c_in, c_out, in_itemsize, n,
                   vmem_budget_bytes=_VMEM_BUDGET_BYTES):
    """Pick a lane-dense spatial tile from a VMEM budget.

    Per lane-column cost ~= double-buffered in/out blocks + f32 in-kernel
    intermediates (x copy, silu, dot results).
    """
    per_l = 2 * (c_in + c_out) * in_itemsize + 2 * (c_in + c_out) * 4
    tile = vmem_budget_bytes // max(per_l, 1)
    tile = min(tile, 128 * 1024)            # ~1-2 MiB blocks already hit ~85% roofline
    tile = max(128, (tile // 128) * 128)    # 128-lane aligned (ragged tail is masked)

    if l <= tile:
        if n == 1 and l >= 256:
            # v7x megacore: guarantee >= 2 parallel grid blocks even at batch 1.
            half = -(-l // 2)
            tile = -(-half // 128) * 128
        else:
            return l, 1                     # full row: always a legal block shape
    return tile, pl.cdiv(l, tile)


def skiper_forward(x, w_combiner, b_combiner):
    """Fused `skiper` forward with component = SiLU (so n_o == n_i).

    x:          (N, C_in, H, W)  NCHW activations.
    w_combiner: (C_out, 2 * C_in) squeezed 1x1-conv weight; the first C_in
                input channels act on component(x), the rest on x (the skip).
    b_combiner: (C_out,)
    """
    n, c_in, h, w = x.shape
    c_out = w_combiner.shape[0]
    assert w_combiner.shape[1] == 2 * c_in, "combiner expects concat([proc, x]) channels"

    l = h * w
    x3 = x.reshape(n, c_in, l)                      # free row-major merge of H, W

    # bf16 inputs: keep SiLU in bf16 (v6e/v7x bf16 VPU/EUP), f32 accumulation
    # through the dot.  f32 inputs compute in f32.
    # TODO(synk): on v5e (no bf16 VALU/EUP) prefer float32 even for bf16 inputs.
    compute_dtype = jnp.bfloat16 if x.dtype == jnp.bfloat16 else jnp.float32

    wp = w_combiner[:, :c_in].astype(compute_dtype)     # applies to component(x)
    ws = w_combiner[:, c_in:].astype(compute_dtype)     # applies to x (skip path)
    b2 = b_combiner.astype(jnp.float32).reshape(c_out, 1)

    in_itemsize = jnp.dtype(x.dtype).itemsize
    tile_l, grid_l = _choose_tile_l(l, c_in, c_out, in_itemsize, n)

    out3 = pl.pallas_call(
        _make_skiper_kernel(compute_dtype),
        out_shape=jax.ShapeDtypeStruct((n, c_out, l), x.dtype),
        grid=(n, grid_l),
        in_specs=[
            pl.BlockSpec((1, c_in, tile_l), lambda i, j: (i, 0, j)),
            pl.BlockSpec((c_out, c_in), lambda i, j: (0, 0)),   # Wp, VMEM resident
            pl.BlockSpec((c_out, c_in), lambda i, j: (0, 0)),   # Ws, VMEM resident
            pl.BlockSpec((c_out, 1), lambda i, j: (0, 0)),      # bias, VMEM resident
        ],
        out_specs=pl.BlockSpec((1, c_out, tile_l), lambda i, j: (i, 0, j)),
        compiler_params=pltpu.CompilerParams(
            dimension_semantics=("parallel", "parallel"),
            vmem_limit_bytes=_VMEM_LIMIT_BYTES,
        ),
    )(x3, wp, ws, b2)

    return out3.reshape(n, c_out, h, w)


if __name__ == "__main__":
    key = jax.random.PRNGKey(0)
    k1, k2, k3 = jax.random.split(key, 3)

    n_i = 4   # input channels
    n_o = 4   # component output channels (SiLU component => n_o == n_i)
    x = jax.random.normal(k1, (2, n_i, 16, 16), dtype=jnp.float32)
    w = jax.random.normal(k2, (n_o, n_i + n_o), dtype=jnp.float32) * 0.1
    b = jax.random.normal(k3, (n_o,), dtype=jnp.float32) * 0.1

    y = skiper_forward(x, w, b)
    jax.block_until_ready(y)

    # Pure-JAX reference with identical semantics to the PyTorch module.
    proc = x * jax.nn.sigmoid(x)                              # component = SiLU
    c = jnp.concatenate([proc, x], axis=1)                    # dim=-3 (channels)
    y_ref = jnp.einsum("nchw,oc->nohw", c, w) + b[None, :, None, None]

    assert y.shape == (2, n_o, 16, 16) and y.dtype == x.dtype
    assert jnp.max(jnp.abs(y - y_ref)) < 1e-4

    print("KERNEL_OK")
</pallas_src>

<mosaic_0001>
module attributes {stable_mosaic.version = 11 : i64} {
  func.func @kernel(%arg0: i32, %arg1: i32, %arg2: memref<1x4x256xf32, #tpu.memory_space<vmem>>, %arg3: memref<4x4xf32, #tpu.memory_space<vmem>>, %arg4: memref<4x4xf32, #tpu.memory_space<vmem>>, %arg5: memref<4x1xf32, #tpu.memory_space<vmem>>, %arg6: memref<1x4x256xf32, #tpu.memory_space<vmem>>) attributes {dimension_semantics = [#tpu.dimension_semantics<parallel>, #tpu.dimension_semantics<parallel>], iteration_bounds = array<i64: 2, 1>, scalar_prefetch = 0 : i64, scratch_operands = 0 : i64, tpu.core_type = #tpu.core_type<tc>, window_params = [{transform_indices = @transform_0, window_bounds = array<i64: 1, 4, 256>}, {pipeline_mode = #tpu.pipeline_mode<synchronous>, transform_indices = @transform_1, window_bounds = array<i64: 4, 4>}, {pipeline_mode = #tpu.pipeline_mode<synchronous>, transform_indices = @transform_2, window_bounds = array<i64: 4, 4>}, {pipeline_mode = #tpu.pipeline_mode<synchronous>, transform_indices = @transform_3, window_bounds = array<i64: 4, 1>}, {transform_indices = @transform_4, window_bounds = array<i64: 1, 4, 256>}]} {
    %c0 = arith.constant 0 : index
    %c0_0 = arith.constant 0 : index
    %c0_1 = arith.constant 0 : index
    %0 = vector.load %arg2[%c0, %c0_0, %c0_1] : memref<1x4x256xf32, #tpu.memory_space<vmem>>, vector<1x4x256xf32>
    %1 = vector.shape_cast %0 : vector<1x4x256xf32> to vector<4x256xf32>
    %2 = arith.negf %1 : vector<4x256xf32>
    %3 = math.exp %2 : vector<4x256xf32>
    %cst = arith.constant 1.000000e+00 : f32
    %4 = vector.broadcast %cst : f32 to vector<4x256xf32>
    %5 = arith.addf %4, %3 : vector<4x256xf32>
    %6 = arith.divf %4, %5 : vector<4x256xf32>
    %7 = arith.mulf %1, %6 : vector<4x256xf32>
    %c0_2 = arith.constant 0 : index
    %c0_3 = arith.constant 0 : index
    %8 = vector.load %arg3[%c0_2, %c0_3] : memref<4x4xf32, #tpu.memory_space<vmem>>, vector<4x4xf32>
    %cst_4 = arith.constant dense<0.000000e+00> : vector<4x256xf32>
    %9 = tpu.matmul %8, %7, %cst_4 {dimension_numbers = #tpu.dot_dimension_numbers<[1], [0], [0], [1], [0, 0, 1, 1], [], []>} : vector<4x4xf32>, vector<4x256xf32>, vector<4x256xf32> -> vector<4x256xf32>
    %c0_5 = arith.constant 0 : index
    %c0_6 = arith.constant 0 : index
    %10 = vector.load %arg4[%c0_5, %c0_6] : memref<4x4xf32, #tpu.memory_space<vmem>>, vector<4x4xf32>
    %cst_7 = arith.constant dense<0.000000e+00> : vector<4x256xf32>
    %11 = tpu.matmul %10, %1, %cst_7 {dimension_numbers = #tpu.dot_dimension_numbers<[1], [0], [0], [1], [0, 0, 1, 1], [], []>} : vector<4x4xf32>, vector<4x256xf32>, vector<4x256xf32> -> vector<4x256xf32>
    %12 = arith.addf %9, %11 : vector<4x256xf32>
    %c0_8 = arith.constant 0 : index
    %c0_9 = arith.constant 0 : index
    %13 = vector.load %arg5[%c0_8, %c0_9] : memref<4x1xf32, #tpu.memory_space<vmem>>, vector<4x1xf32>
    %14 = vector.broadcast %13 : vector<4x1xf32> to vector<4x256xf32>
    %15 = arith.addf %12, %14 : vector<4x256xf32>
    %c0_10 = arith.constant 0 : index
    %c0_11 = arith.constant 0 : index
    %c0_12 = arith.constant 0 : index
    %16 = vector.load %arg6[%c0_10, %c0_11, %c0_12] : memref<1x4x256xf32, #tpu.memory_space<vmem>>, vector<1x4x256xf32>
    %17 = vector.shape_cast %16 : vector<1x4x256xf32> to vector<4x256xf32>
    %18 = vector.shape_cast %15 : vector<4x256xf32> to vector<1x4x256xf32>
    tpu.vector_store %arg6[%c0_10, %c0_11, %c0_12], %18 {strides = array<i32>} : memref<1x4x256xf32, #tpu.memory_space<vmem>>, vector<1x4x256xf32>,
    return
  }
  func.func @transform_0(%arg0: i32, %arg1: i32) -> (i32, i32, i32) {
    %c0_i32 = arith.constant 0 : i32
    %c0_i32_0 = arith.constant 0 : i32
    return %arg0, %c0_i32, %arg1 : i32, i32, i32
  }
  func.func @transform_1(%arg0: i32, %arg1: i32) -> (i32, i32) {
    %c0_i32 = arith.constant 0 : i32
    %c0_i32_0 = arith.constant 0 : i32
    %c0_i32_1 = arith.constant 0 : i32
    return %c0_i32, %c0_i32_0 : i32, i32
  }
  func.func @transform_2(%arg0: i32, %arg1: i32) -> (i32, i32) {
    %c0_i32 = arith.constant 0 : i32
    %c0_i32_0 = arith.constant 0 : i32
    %c0_i32_1 = arith.constant 0 : i32
    return %c0_i32, %c0_i32_0 : i32, i32
  }
  func.func @transform_3(%arg0: i32, %arg1: i32) -> (i32, i32) {
    %c0_i32 = arith.constant 0 : i32
    %c0_i32_0 = arith.constant 0 : i32
    %c0_i32_1 = arith.constant 0 : i32
    return %c0_i32, %c0_i32_0 : i32, i32
  }
  func.func @transform_4(%arg0: i32, %arg1: i32) -> (i32, i32, i32) {
    %c0_i32 = arith.constant 0 : i32
    %c0_i32_0 = arith.constant 0 : i32
    return %arg0, %c0_i32, %arg1 : i32, i32, i32
  }
}

</mosaic_0001>

<bundles_post_ra>
// kernel: tpu_custom_call.1
= control target key start
LH: loop header
LB: loop body
LE: loop exit
PB: predicated region body
PF: predicated region fallthrough
CT: control target
= control target key end

     0   :  { %9 = vsyncpa [#allocation3], 0  ;;  %s904_s0 = inlined_call_operand.hbm [shape: f32[2,4,256], index: 0, kind: input, shape index: {}]   ;;  %s905_s1 = inlined_call_operand.vmem [shape: f32[4,4], index: 1, kind: input, shape index: {}]   ;;  %s906_s2 = inlined_call_operand.vmem [shape: f32[4,4], index: 2, kind: input, shape index: {}]   ;;  %s907_s3 = inlined_call_operand.vmem [shape: f32[4,1], index: 3, kind: input, shape index: {}]   ;;  %s908_s4 = inlined_call_operand.hbm [shape: f32[2,4,256], index: 4, kind: output, shape index: {}]  }
   0x1   :  { %11 = vsyncpa [#allocation3 + $0x1], 0 }
   0x2   :  { %12 = vsyncpa [#allocation4], 0 }
   0x3   :  { %14 = vsyncpa [#allocation4 + $0x1], 0  ;;  %s753_s15 = smov 0   ;;  %s755_s16 = smov 0  }
   0x4   :  { %s757_s17 = smov 0   ;;  %s759_s18 = smov 0  }
   0x5   :  { %s761_s19 = smov 0   ;;  %s763_s20 = smov 0  }
   0x6 LB: > { %s520_s21 = sadd.s32 4294967295, %s722_s20   ;;  %s521_s22 = sadd.s32 4294967294, %s722_s20   ;;  %s722_s20 = sphi %s763_s20, %s20_s20   ;;  %s718_s19 = sphi %s761_s19, %s920_s19   ;;  %s714_s18 = sphi %s759_s18, %s919_s18   ;;  %s710_s17 = sphi %s757_s17, %s918_s17   ;;  %s706_s16 = sphi %s755_s16, %s917_s16   ;;  %s702_s15 = sphi %s753_s15, %s916_s15  }
   0x7   : > { %s32_s23 = sadd.s32 1, %s718_s19  ;;  %s41_s24 = sadd.s32 1, %s710_s17 }
   0x8   : > { %p34_p0 = scmp.ge.s32.totalorder %s32_s23, 2  ;;  %p48_p1 = scmp.ne.s32.totalorder %s710_s17, %s706_s16 }
   0x9   : > { %p49_p2 = scmp.eq.s32.totalorder %s722_s20, 0  ;;  %p54_p3 = scmp.ne.s32.totalorder %s706_s16, %s702_s15 }
   0xa   : > { %s922_s23 = smov (%p34_p0, %s32_s23), 0  ;;  %p55_p5 = scmp.eq.s32.totalorder %s520_s21, 0 }
   0xb   : > { %p794_p4 = por %p49_p2, %p48_p1  ;;  %s36_s26 = ssub.s32 %s718_s19, %s922_s23 }
   0xc   : > { %p143_p6 = scmp.eq.s32.totalorder %s520_s21, 1  ;;  %p39_p7 = scmp.eq.s32.totalorder %s36_s26, 0 }
   0xd   : > { %p800_p8 = por %p55_p5, %p54_p3  ;;  %p149_p10 = scmp.eq.s32.totalorder %s521_s22, 1 }
   0xe   : > { %p804_p9 = por %p143_p6, %p48_p1  ;;  %p556_p13 = scmp.lt.s32.totalorder %s722_s20, 2 }
   0xf   : > { %s809_s29 = scalar_select %p39_p7, %s710_s17, %s41_s24  }
  0x10   : > { %p811_p11 = por %p149_p10, %p54_p3  ;;  %s178_s5 = sand.u32 1, %s710_s17  }
  0x11   : > { %s524_s6 = sshll.u32 %s178_s5, 3  ;;  %s542_s7 = sshll.u32 %s718_s19, 7 }
  0x12   : > { %s912_s30 = scalar_select %p811_p11, 1, 0 }
  0x13   : > { %s190_s10 = scalar_lea.hbm %s904_s0, %s542_s7  ;;  %s182_s11 = scalar_lea.vmem [#allocation2], %s524_s6 }
  0x14   : > { %s192_s12 = sshll.u32 %s182_s11, 4  ;;  %p824_p0 = pnand %p556_p13, %p794_p4  ;;  %s193_s12 = int_to_ptr.vmem [resolvable:$true] %s192_s12 }
  0x15   : > { %p527_p1 = scmp.ge.s32.totalorder %s722_s20, 1  ;;  %p197_p2 = scmp.lt.s32.totalorder %s722_s20, 3 }
  0x16   : > { %s179_s14 = scalar_lea.sflag [#allocation3], %s178_s5  ;;  %p616_p3 = pneg %p824_p0 }
  0x17   : > { %s627_s21 = scalar_lea.vmem %s193_s12, 128  ;;  %s724_s22 = smov [#allocation2]  }
  0x18   : > { %p628_p5 = scmp.ne.s32.totalorder %s193_s12, %s627_s21  ;;  %s632_s24 = sshll.u32 %s724_s22, 4  ;;  %s633_s24 = int_to_ptr.vmem [resolvable:$false] %s632_s24 }
  0x19   : > { %s634_s26 = scalar_lea.vmem %s633_s24, 256  ;;  %p635_p10 = scmp.lt.s32.totalorder %s193_s12, %s633_s24 }
  0x1a   : > { %p630_p6 = pnand %p628_p5, %p616_p3  ;;  %p636_p12 = scmp.lt.s32.totalorder %s634_s26, %s627_s21 }
  0x1c   : > { %p631_p7 = pneg %p630_p6  ;;  %p637_p4 = por %p636_p12, %p635_p10 }
  0x1e   : > { %p638_p13 = pnand %p637_p4, %p631_p7 }
  0x20   : > { %641 = shalt.err (!%p638_p13)
}
  0x21   : > { %551 = dma.hbm_to_vmem [thread:$0]  (!%p824_p0), %s190_s10, 128, %s193_s12, %s179_s14  }
  0x22   : > { %p198_p11 = pnand %p527_p1, %p197_p2 }
  0x23   : > { %s839_s25 = sand.u32 (!%p198_p11), 1, %s706_s16  }
  0x24   : > { %201 = sbr.rel (%p198_p11) target bundleno = 295 (0x127), region = 36  ;;  %s528_s5 = sshll.u32 (!%p198_p11), %s839_s25, 3 }
  0x25   : > { %s204_s6 = scalar_lea.sflag (!%p198_p11), [#allocation3], %s839_s25  ;;  %s207_s7 = scalar_lea.vmem (!%p198_p11), [#allocation2], %s528_s5 }
  0x29   : > { %693 = dma.done.wait (%p800_p8), %s204_s6, 128  }
  0x2a   : > { %695 = vsyncadd (%p800_p8), %s204_s6, 4294967168  ;;  %v725_v0 = vmov 0.0   ;;  %v726_v1 = vmov 0   ;;  %v234_v2 = vld [vmem:[%s207_s7] sm:$0xff]  ;;  %vm250_vm0 = vcmask 1043456   ;;  %vm246_vm1 = vcmask 31744  }
  0x2b   : > { %319 = vmatprep.mubr.f32.mxu0 %v725_v0  ;;  %399 = vmatprep.mubr.f32.mxu1 %v725_v0  ;;  %v530_v3 = vmul.f32 -1.442695, %v234_v2  ;;  %v245_v4 = vcombine.high %v234_v2, %v234_v2  ;;  %v406_v5 = vld [vmem:[%s907_s3] sm:$0xf]  ;;  %s543_s13 = sshll.u32 %s714_s18, 7  ;;  %s231_s14 = scalar_lea.vmem [#allocation5], %s528_s5 }
  0x2c   : > { %608 = vset.pattern.permute.xlu0 %v726_v1  ;;  %v243_v6 = vld [vmem:[%s906_s2] sm:$0xf]  ;;  %s436_s21 = sshll.u32 %s231_s14, 4  ;;  %s434_s26 = scalar_lea.hbm %s908_s4, %s543_s13  ;;  %s437_s21 = int_to_ptr.vmem [resolvable:$true] %s436_s21 }
  0x2d   : > { %409 = vperm.xlu0 %608, %v406_v5   ;;  %610 = vpow2.f32 %v530_v3  ;;  %531 = vmatprep.subr.msk.mxu0 %vm250_vm0, %v245_v4  ;;  %v242_v12 = vld [vmem:[%s905_s1] sm:$0xf]  ;;  %s420_s6 = scalar_lea.sflag [#allocation4], %s839_s25  ;;  %s642_s7 = scalar_lea.vmem %s437_s21, 128 }
  0x2e   : > { %532 = vmatpush1.msk.msra.mxu0 %vm250_vm0, %v234_v2  ;;  %p643_p8 = scmp.ne.s32.totalorder %s437_s21, %s642_s7  ;;  %s727_s8 = smov [#allocation5]  }
  0x2f   : > { %533 = vmatmul.mubr.msk.f32.vlgmr.msra.gmra.mxu0 %vm246_vm1, %v243_v6  ;;  %s646_s18 = sshll.u32 %s727_s8, 4  ;;  %s647_s18 = int_to_ptr.vmem [resolvable:$false] %s646_s18 }
  0x30   : > { %p644_p11 = pnand %p643_p8, %p804_p9  ;;  %s648_s5 = scalar_lea.vmem %s647_s18, 256 }
  0x31   : > { %p649_p0 = scmp.lt.s32.totalorder %s437_s21, %s647_s18  ;;  %p650_p1 = scmp.lt.s32.totalorder %s648_s5, %s642_s7 }
  0x32   : > { %p645_p12 = pneg %p644_p11 }
  0x33   : > { %p651_p2 = por %p650_p1, %p649_p0 }
  0x35   : > { %p652_p3 = pnand %p651_p2, %p645_p12 }
  0x3a   : > { %v611_v7 = vpop.eup %610 }
  0x3b   : > { %v238_v8 = vadd.f32 1.0, %v611_v7 }
  0x3d   : > { %612 = vrcp.f32 %v238_v8 }
  0x4a   : > { %v613_v9 = vpop.eup %612 }
  0x4b   : > { %v241_v10 = vmul.f32 %v613_v9, %v234_v2 }
  0x4d   : > { %v327_v11 = vcombine.high %v241_v10, %v241_v10 }
  0x4f   : > { %534 = vmatprep.subr.msk.mxu1 %vm250_vm0, %v327_v11 }
  0x50   : > { %535 = vmatpush1.msk.msra.mxu1 %vm250_vm0, %v241_v10 }
  0x51   : > { %536 = vmatmul.mubr.msk.f32.vlgmr.msra.gmra.mxu1 %vm246_vm1, %v242_v12 }
  0xa8   : > { %v410_v16 = vpop.permute.xlu0 %409 }
  0xef   : > { %v321_v13 = vpop.f32.mrf.mxu0 }
  0xf1   : > { %v323_v17 = vpop.f32.mrf.mxu0 }
 0x111   : > { %v401_v14 = vpop.f32.mrf.mxu1 }
 0x112   : > { %v402_v15 = vadd.f32 %v401_v14, %v321_v13 }
 0x113   : > { %v403_v18 = vpop.f32.mrf.mxu1 }
 0x114   : > { %v404_v19 = vadd.f32 %v403_v18, %v323_v17  ;;  %v412_v20 = vadd.f32 %v410_v16, %v402_v15 }
 0x116   : > { %v413_v21 = vadd.f32 %v410_v16, %v404_v19 }
 0x118   : > { %v416_v22 = vcombine.low %v412_v20, %v413_v21 }
 0x11a   : > { %418 = vst [vmem:[%s231_s14] sm:$0xff] %v416_v22 }
 0x11b   : > { %655 = shalt.err (!%p652_p3)
}
 0x11c   : > { %s656_s9 = scalar_lea.hbm %s434_s26, 128  ;;  %s660_s11 = scalar_lea.hbm %s908_s4, 256 }
 0x11d   : > { %p657_p5 = scmp.ne.s32.totalorder %s434_s26, %s656_s9  ;;  %p661_p10 = scmp.lt.s32.totalorder %s434_s26, %s908_s4 }
 0x11e   : > { %p662_p4 = scmp.lt.s32.totalorder %s660_s11, %s656_s9 }
 0x11f   : > { %p658_p6 = pnand %p657_p5, %p804_p9 }
 0x120   : > { %p663_p13 = por %p662_p4, %p661_p10 }
 0x121   : > { %p659_p7 = pneg %p658_p6 }
 0x123   : > { %p664_p8 = pnand %p663_p13, %p659_p7 }
 0x125   : > { %667 = shalt.err (!%p664_p8)
}
 0x126   : > { %546 = dma.vmem_to_hbm [thread:$0]  (%p804_p9), %s437_s21, 128, %s434_s26, %s420_s6  }
 0x127 PF: > { %s448_s13 = sand.u32 1, %s702_s15   ;;  %p914_p11 = scmp.ne.s32.totalorder %s912_s30, 0 }
 0x128   : > { %p915_p12 = scmp.ge.s32.totalorder %s722_s20, 2  ;;  %s449_s14 = scalar_lea.sflag [#allocation4], %s448_s13 }
 0x12a   : > { %p553_p0 = pnand %p915_p12, %p914_p11 }
 0x12c   : > { %p554_p1 = pneg %p553_p0 }
 0x12e   : > { %697 = dma.done.wait (%p554_p1), %s449_s14, 128  }
 0x12f   : > { %699 = vsyncadd (%p554_p1), %s449_s14, 4294967168  ;;  %s20_s20 = sadd.s32 1, %s722_s20   ;;  %s916_s15 = smov %s706_s16 }
 0x130   : > { %p17_p2 = scmp.ge.s32.totalorder %s20_s20, 4   ;;  %s917_s16 = smov %s710_s17 }
 0x131   : > { %s918_s17 = smov %s809_s29  ;;  %s919_s18 = smov %s718_s19 }
 0x132   : > { %s920_s19 = smov %s922_s23  ;;  %19 = sbr.rel (!%p17_p2) target bundleno = 6 (0x6), region = 81 }
 0x137   :  { %454 = vsyncpa [#allocation3], 1 }
 0x138   :  { %456 = vsyncpa [#allocation3 + $0x1], 1 }
 0x139   :  { %457 = vsyncpa [#allocation4], 1 }
 0x13a   :  { %459 = vsyncpa [#allocation4 + $0x1], 1 }

</bundles_post_ra>
